<compile_context>
chip_gen: v7x
topology: tpu7x:2x2x1
jax: 0.10.0
libtpu: 0.0.40
codegen_flags: <defaults>
</compile_context>

<pallas_src>
import functools

import jax
import jax.numpy as jnp
from jax.experimental import pallas as pl
from jax.experimental.pallas import tpu as pltpu

LANE = 128
SUBLANE = 8


def _round_up(x, m):
    return ((x + m - 1) // m) * m


def _fused_mlp_kernel(x_ref, w_ref, b_ref, o_ref, *, dims):
    """Whole MLP for one batch tile.

    x_ref: (TB, n_in)   unpadded batch tile
    w_ref: (L, P, P)    all layer weights (zero-padded), VMEM-resident
    b_ref: (L, 1, P)    all layer biases (zero-padded)
    o_ref: (TB, n_out)  narrow output tile (only real columns written)
    """
    n_layers_total = len(dims) - 1
    h = x_ref[...]
    for l in range(n_layers_total):           # small static unroll (nLayers+1)
        k_in, k_out = dims[l], dims[l + 1]
        # Static ref slices -> zero-cost views; dot runs on the true K/N.
        y = (jnp.dot(h, w_ref[l, :k_in, :k_out],
                     preferred_element_type=jnp.float32)
             + b_ref[l, :, :k_out])
        if l < n_layers_total - 1:
            # SiLU(y) = y * sigmoid(y); exp + approx reciprocal both on EUP.
            sig = pl.reciprocal(1.0 + jnp.exp(-y), approx=True)
            h = y * sig
        else:
            # Final sigmoid: exact reciprocal (EUP/VALU have slack; tightens error).
            h = pl.reciprocal(1.0 + jnp.exp(-y), approx=False)
    o_ref[...] = h.astype(o_ref.dtype)


def stack_params(params):
    """Stack zero-padded weights/biases ONCE per parameter set (hoisted out of
    the per-call path).  Zero padding keeps padded lanes exactly zero through
    every SiLU layer, so real outputs are unaffected."""
    dims = tuple([params[0][0].shape[0]] + [w.shape[1] for (w, _) in params])
    L = len(params)
    P = _round_up(max(dims), LANE)
    w_stack = jnp.zeros((L, P, P), jnp.float32)
    b_stack = jnp.zeros((L, 1, P), jnp.float32)
    for l, (w, b) in enumerate(params):
        din, dout = w.shape
        w_stack = w_stack.at[l, :din, :dout].set(w.astype(jnp.float32))
        b_stack = b_stack.at[l, 0, :dout].set(b.astype(jnp.float32))
    return w_stack, b_stack, dims


def net_forward(Z, w_stack, b_stack, dims, *, batch_tile=1024):
    """Full Net.forward as ONE fused Pallas kernel call.

    Z: (B, n_in) float32.  w_stack/b_stack/dims from stack_params(params).
    batch_tile: rows per grid step (rounded to a multiple of 8).
    """
    B, n_in = Z.shape
    assert n_in == dims[0]
    L = len(dims) - 1
    n_out = dims[-1]
    P = w_stack.shape[-1]

    # --- batch tiling (sublane aligned) --------------------------------------
    batch_tile = max(SUBLANE, _round_up(int(batch_tile), SUBLANE))
    B8 = _round_up(B, SUBLANE)
    TB = min(batch_tile, B8)
    # v7x: make sure the "parallel" batch axis has >= 2 steps when the batch
    # spans more than one sublane tile, so both TensorCores get work.
    if B8 > SUBLANE and TB >= B8:
        TB = _round_up(-(-B8 // 2), SUBLANE)
    B_pad = _round_up(B, TB)

    x = Z.astype(jnp.float32)
    if B_pad != B:
        x = jnp.pad(x, ((0, B_pad - B), (0, 0)))   # row pad only; no lane pad

    kernel = functools.partial(_fused_mlp_kernel, dims=dims)
    out = pl.pallas_call(
        kernel,
        out_shape=jax.ShapeDtypeStruct((B_pad, n_out), jnp.float32),
        grid=(B_pad // TB,),
        in_specs=[
            pl.BlockSpec((TB, n_in), lambda i: (i, 0)),      # unpadded batch tile
            pl.BlockSpec((L, P, P), lambda i: (0, 0, 0)),    # weights, resident
            pl.BlockSpec((L, 1, P), lambda i: (0, 0, 0)),    # biases, resident
        ],
        out_specs=pl.BlockSpec((TB, n_out), lambda i: (i, 0)),   # narrow output
        compiler_params=pltpu.CompilerParams(
            dimension_semantics=("parallel",),
        ),
    )(x, w_stack, b_stack)
    return out if B_pad == B else out[:B]


def init_params(key, n_in, n_out, n_nodes, n_layers):
    """Deterministic init matching nn.Linear shapes of Net (W stored as (in, out))."""
    dims = [n_in] + [n_nodes] * n_layers + [n_out]
    params = []
    for i in range(len(dims) - 1):
        din, dout = dims[i], dims[i + 1]
        key, kw, kb = jax.random.split(key, 3)
        bound = 1.0 / jnp.sqrt(jnp.float32(din))
        w = jax.random.uniform(kw, (din, dout), jnp.float32, -bound, bound)
        b = jax.random.uniform(kb, (dout,), jnp.float32, -bound, bound)
        params.append((w, b))
    return params


def net_forward_ref(Z, params):
    """Pure-JAX reference (mirrors the PyTorch forward)."""
    h = Z
    for (w, b) in params[:-1]:
        y = h @ w + b
        h = y * jax.nn.sigmoid(y)
    w, b = params[-1]
    return jax.nn.sigmoid(h @ w + b)


if __name__ == "__main__":
    # Shapes consistent with Net(n_in=16, n_out=8, nNodes=32, nLayers=3).
    n_in, n_out, n_nodes, n_layers = 16, 8, 32, 3

    key = jax.random.PRNGKey(0)
    key, kz = jax.random.split(key)
    Z = jax.random.normal(kz, (8, n_in), dtype=jnp.float32)
    params = init_params(key, n_in, n_out, n_nodes, n_layers)

    # Hoisted, once-per-parameter-set stacking.
    w_stack, b_stack, dims = stack_params(params)
    w_stack, b_stack = jax.block_until_ready((w_stack, b_stack))

    out = jax.block_until_ready(net_forward(Z, w_stack, b_stack, dims))
    ref = net_forward_ref(Z, params)
    assert out.shape == (8, n_out)
    # approx reciprocal only on hidden SiLU layers; exact sigmoid at the end.
    assert jnp.allclose(out, ref, atol=2e-3, rtol=2e-3), "mismatch vs reference (small batch)"

    # Larger, non-tile-multiple batch exercises the multi-step batch grid
    # (>=2 parallel steps) + row padding.
    key, kz2 = jax.random.split(key)
    Z2 = jax.random.normal(kz2, (300, n_in), dtype=jnp.float32)
    out2 = jax.block_until_ready(net_forward(Z2, w_stack, b_stack, dims))
    ref2 = net_forward_ref(Z2, params)
    assert out2.shape == (300, n_out)
    assert jnp.allclose(out2, ref2, atol=2e-3, rtol=2e-3), "mismatch vs reference (tiled batch)"

    print("KERNEL_OK")
</pallas_src>

<mosaic_0001>
module attributes {stable_mosaic.version = 11 : i64} {
  func.func @_fused_mlp_kernel(%arg0: i32, %arg1: memref<8x16xf32, #tpu.memory_space<vmem>>, %arg2: memref<4x128x128xf32, #tpu.memory_space<vmem>>, %arg3: memref<4x1x128xf32, #tpu.memory_space<vmem>>, %arg4: memref<8x8xf32, #tpu.memory_space<vmem>>) attributes {dimension_semantics = [#tpu.dimension_semantics<parallel>], iteration_bounds = array<i64: 1>, scalar_prefetch = 0 : i64, scratch_operands = 0 : i64, tpu.core_type = #tpu.core_type<tc>, window_params = [{transform_indices = @transform_0, window_bounds = array<i64: 8, 16>}, {pipeline_mode = #tpu.pipeline_mode<synchronous>, transform_indices = @transform_1, window_bounds = array<i64: 4, 128, 128>}, {pipeline_mode = #tpu.pipeline_mode<synchronous>, transform_indices = @transform_2, window_bounds = array<i64: 4, 1, 128>}, {transform_indices = @transform_3, window_bounds = array<i64: 8, 8>}]} {
    %c0 = arith.constant 0 : index
    %c0_0 = arith.constant 0 : index
    %0 = vector.load %arg1[%c0, %c0_0] : memref<8x16xf32, #tpu.memory_space<vmem>>, vector<8x16xf32>
    %c0_1 = arith.constant 0 : index
    %c0_2 = arith.constant 0 : index
    %c0_3 = arith.constant 0 : index
    %1 = vector.load %arg2[%c0_1, %c0_2, %c0_3] : memref<4x128x128xf32, #tpu.memory_space<vmem>>, vector<1x16x32xf32>
    %2 = vector.shape_cast %1 : vector<1x16x32xf32> to vector<16x32xf32>
    %cst = arith.constant dense<0.000000e+00> : vector<8x32xf32>
    %3 = tpu.matmul %0, %2, %cst {dimension_numbers = #tpu.dot_dimension_numbers<[1], [0], [0], [1], [0, 0, 1, 1], [], []>} : vector<8x16xf32>, vector<16x32xf32>, vector<8x32xf32> -> vector<8x32xf32>
    %c0_4 = arith.constant 0 : index
    %c0_5 = arith.constant 0 : index
    %c0_6 = arith.constant 0 : index
    %4 = vector.load %arg3[%c0_4, %c0_5, %c0_6] : memref<4x1x128xf32, #tpu.memory_space<vmem>>, vector<1x1x32xf32>
    %5 = vector.shape_cast %4 : vector<1x1x32xf32> to vector<1x32xf32>
    %6 = vector.broadcast %5 : vector<1x32xf32> to vector<8x32xf32>
    %7 = arith.addf %3, %6 : vector<8x32xf32>
    %cst_7 = arith.constant 0.000000e+00 : f32
    %8 = vector.broadcast %cst_7 : f32 to vector<8x32xf32>
    %9 = arith.subf %8, %7 : vector<8x32xf32>
    %10 = math.exp %9 : vector<8x32xf32>
    %cst_8 = arith.constant 1.000000e+00 : f32
    %11 = vector.broadcast %cst_8 : f32 to vector<8x32xf32>
    %12 = arith.addf %11, %10 : vector<8x32xf32>
    %13 = tpu.reciprocal %12 {approx = true} : vector<8x32xf32> -> vector<8x32xf32>
    %14 = arith.mulf %7, %13 : vector<8x32xf32>
    %c1 = arith.constant 1 : index
    %c0_9 = arith.constant 0 : index
    %c0_10 = arith.constant 0 : index
    %15 = vector.load %arg2[%c1, %c0_9, %c0_10] : memref<4x128x128xf32, #tpu.memory_space<vmem>>, vector<1x32x32xf32>
    %16 = vector.shape_cast %15 : vector<1x32x32xf32> to vector<32x32xf32>
    %cst_11 = arith.constant dense<0.000000e+00> : vector<8x32xf32>
    %17 = tpu.matmul %14, %16, %cst_11 {dimension_numbers = #tpu.dot_dimension_numbers<[1], [0], [0], [1], [0, 0, 1, 1], [], []>} : vector<8x32xf32>, vector<32x32xf32>, vector<8x32xf32> -> vector<8x32xf32>
    %c1_12 = arith.constant 1 : index
    %c0_13 = arith.constant 0 : index
    %c0_14 = arith.constant 0 : index
    %18 = vector.load %arg3[%c1_12, %c0_13, %c0_14] : memref<4x1x128xf32, #tpu.memory_space<vmem>>, vector<1x1x32xf32>
    %19 = vector.shape_cast %18 : vector<1x1x32xf32> to vector<1x32xf32>
    %20 = vector.broadcast %19 : vector<1x32xf32> to vector<8x32xf32>
    %21 = arith.addf %17, %20 : vector<8x32xf32>
    %cst_15 = arith.constant 0.000000e+00 : f32
    %22 = vector.broadcast %cst_15 : f32 to vector<8x32xf32>
    %23 = arith.subf %22, %21 : vector<8x32xf32>
    %24 = math.exp %23 : vector<8x32xf32>
    %cst_16 = arith.constant 1.000000e+00 : f32
    %25 = vector.broadcast %cst_16 : f32 to vector<8x32xf32>
    %26 = arith.addf %25, %24 : vector<8x32xf32>
    %27 = tpu.reciprocal %26 {approx = true} : vector<8x32xf32> -> vector<8x32xf32>
    %28 = arith.mulf %21, %27 : vector<8x32xf32>
    %c2 = arith.constant 2 : index
    %c0_17 = arith.constant 0 : index
    %c0_18 = arith.constant 0 : index
    %29 = vector.load %arg2[%c2, %c0_17, %c0_18] : memref<4x128x128xf32, #tpu.memory_space<vmem>>, vector<1x32x32xf32>
    %30 = vector.shape_cast %29 : vector<1x32x32xf32> to vector<32x32xf32>
    %cst_19 = arith.constant dense<0.000000e+00> : vector<8x32xf32>
    %31 = tpu.matmul %28, %30, %cst_19 {dimension_numbers = #tpu.dot_dimension_numbers<[1], [0], [0], [1], [0, 0, 1, 1], [], []>} : vector<8x32xf32>, vector<32x32xf32>, vector<8x32xf32> -> vector<8x32xf32>
    %c2_20 = arith.constant 2 : index
    %c0_21 = arith.constant 0 : index
    %c0_22 = arith.constant 0 : index
    %32 = vector.load %arg3[%c2_20, %c0_21, %c0_22] : memref<4x1x128xf32, #tpu.memory_space<vmem>>, vector<1x1x32xf32>
    %33 = vector.shape_cast %32 : vector<1x1x32xf32> to vector<1x32xf32>
    %34 = vector.broadcast %33 : vector<1x32xf32> to vector<8x32xf32>
    %35 = arith.addf %31, %34 : vector<8x32xf32>
    %cst_23 = arith.constant 0.000000e+00 : f32
    %36 = vector.broadcast %cst_23 : f32 to vector<8x32xf32>
    %37 = arith.subf %36, %35 : vector<8x32xf32>
    %38 = math.exp %37 : vector<8x32xf32>
    %cst_24 = arith.constant 1.000000e+00 : f32
    %39 = vector.broadcast %cst_24 : f32 to vector<8x32xf32>
    %40 = arith.addf %39, %38 : vector<8x32xf32>
    %41 = tpu.reciprocal %40 {approx = true} : vector<8x32xf32> -> vector<8x32xf32>
    %42 = arith.mulf %35, %41 : vector<8x32xf32>
    %c3 = arith.constant 3 : index
    %c0_25 = arith.constant 0 : index
    %c0_26 = arith.constant 0 : index
    %43 = vector.load %arg2[%c3, %c0_25, %c0_26] : memref<4x128x128xf32, #tpu.memory_space<vmem>>, vector<1x32x8xf32>
    %44 = vector.shape_cast %43 : vector<1x32x8xf32> to vector<32x8xf32>
    %cst_27 = arith.constant dense<0.000000e+00> : vector<8x8xf32>
    %45 = tpu.matmul %42, %44, %cst_27 {dimension_numbers = #tpu.dot_dimension_numbers<[1], [0], [0], [1], [0, 0, 1, 1], [], []>} : vector<8x32xf32>, vector<32x8xf32>, vector<8x8xf32> -> vector<8x8xf32>
    %c3_28 = arith.constant 3 : index
    %c0_29 = arith.constant 0 : index
    %c0_30 = arith.constant 0 : index
    %46 = vector.load %arg3[%c3_28, %c0_29, %c0_30] : memref<4x1x128xf32, #tpu.memory_space<vmem>>, vector<1x1x8xf32>
    %47 = vector.shape_cast %46 : vector<1x1x8xf32> to vector<1x8xf32>
    %48 = vector.broadcast %47 : vector<1x8xf32> to vector<8x8xf32>
    %49 = arith.addf %45, %48 : vector<8x8xf32>
    %cst_31 = arith.constant 0.000000e+00 : f32
    %50 = vector.broadcast %cst_31 : f32 to vector<8x8xf32>
    %51 = arith.subf %50, %49 : vector<8x8xf32>
    %52 = math.exp %51 : vector<8x8xf32>
    %cst_32 = arith.constant 1.000000e+00 : f32
    %53 = vector.broadcast %cst_32 : f32 to vector<8x8xf32>
    %54 = arith.addf %53, %52 : vector<8x8xf32>
    %55 = tpu.reciprocal %54 : vector<8x8xf32> -> vector<8x8xf32>
    %c0_33 = arith.constant 0 : index
    %c0_34 = arith.constant 0 : index
    %56 = vector.load %arg4[%c0_33, %c0_34] : memref<8x8xf32, #tpu.memory_space<vmem>>, vector<8x8xf32>
    tpu.vector_store %arg4[%c0_33, %c0_34], %55 {strides = array<i32>} : memref<8x8xf32, #tpu.memory_space<vmem>>, vector<8x8xf32>,
    return
  }
  func.func @transform_0(%arg0: i32) -> (i32, i32) {
    %c0_i32 = arith.constant 0 : i32
    %c0_i32_0 = arith.constant 0 : i32
    return %arg0, %c0_i32 : i32, i32
  }
  func.func @transform_1(%arg0: i32) -> (i32, i32, i32) {
    %c0_i32 = arith.constant 0 : i32
    %c0_i32_0 = arith.constant 0 : i32
    %c0_i32_1 = arith.constant 0 : i32
    %c0_i32_2 = arith.constant 0 : i32
    return %c0_i32, %c0_i32_0, %c0_i32_1 : i32, i32, i32
  }
  func.func @transform_2(%arg0: i32) -> (i32, i32, i32) {
    %c0_i32 = arith.constant 0 : i32
    %c0_i32_0 = arith.constant 0 : i32
    %c0_i32_1 = arith.constant 0 : i32
    %c0_i32_2 = arith.constant 0 : i32
    return %c0_i32, %c0_i32_0, %c0_i32_1 : i32, i32, i32
  }
  func.func @transform_3(%arg0: i32) -> (i32, i32) {
    %c0_i32 = arith.constant 0 : i32
    %c0_i32_0 = arith.constant 0 : i32
    return %arg0, %c0_i32 : i32, i32
  }
}

</mosaic_0001>

<bundles_post_ra>
// kernel: tpu_custom_call.1
= control target key start
LH: loop header
LB: loop body
LE: loop exit
PB: predicated region body
PF: predicated region fallthrough
CT: control target
= control target key end

     0   :  { %8 = vsyncpa [#allocation3], 0  ;;  %s708_s0 = inlined_call_operand.hbm [shape: f32[8,16], index: 0, kind: input, shape index: {}]   ;;  %s709_s1 = inlined_call_operand.hbm [shape: f32[4,128,128], index: 1, kind: input, shape index: {}]   ;;  %s710_s2 = inlined_call_operand.vmem [shape: f32[4,1,128], index: 2, kind: input, shape index: {}]   ;;  %s711_s3 = inlined_call_operand.hbm [shape: f32[8,8], index: 3, kind: output, shape index: {}]  }
   0x1   :  { %9 = vsyncpa [#allocation6], 0 }
   0x2   :  { %10 = vsyncpa [#allocation4], 0  ;;  %s611_s12 = smov [#allocation2]   ;;  %s612_s14 = smov [#allocation5]  }
   0x3   :  { %s17_s13 = sshll.u32 %s611_s12, 4  ;;  %s26_s15 = sshll.u32 %s612_s14, 4  ;;  %s18_s13 = int_to_ptr.vmem [resolvable:$true] %s17_s13  ;;  %s639_s15 = int_to_ptr.vmem [resolvable:$true] %s26_s15 }
   0x4   :  { %s539_s18 = scalar_lea.hbm %s708_s0, 128 }
   0x5   :  { %p540_p0 = scmp.ne.s32.totalorder %s708_s0, %s539_s18  ;;  %p543_p1 = scmp.lt.u32.totalorder %s539_s18, %s708_s0 }
   0x7   :  { %p545_p2 = pnand %p543_p1, %p540_p0 }
   0x9   :  { %548 = shalt.err (!%p545_p2)
}
   0xa   :  { %s549_s23 = scalar_lea.vmem %s18_s13, 128  ;;  %p554_p4 = scmp.lt.s32.totalorder %s18_s13, %s18_s13 }
   0xb   :  { %p550_p3 = scmp.ne.s32.totalorder %s18_s13, %s549_s23  ;;  %p555_p5 = scmp.lt.s32.totalorder %s549_s23, %s549_s23 }
   0xd   :  { %p556_p6 = por %p555_p5, %p554_p4 }
   0xf   :  { %p557_p7 = pnand %p556_p6, %p550_p3 }
  0x11   :  { %560 = shalt.err (!%p557_p7)
}
  0x12   :  { %20 = dma.hbm_to_vmem [thread:$0]  %s708_s0, 128, %s18_s13, [#allocation3]  }
  0x13   :  { %s561_s28 = scalar_lea.hbm %s709_s1, 8192 }
  0x14   :  { %p562_p8 = scmp.ne.s32.totalorder %s709_s1, %s561_s28  ;;  %p565_p9 = scmp.lt.u32.totalorder %s561_s28, %s709_s1 }
  0x16   :  { %p567_p10 = pnand %p565_p9, %p562_p8 }
  0x18   :  { %570 = shalt.err (!%p567_p10)
}
  0x19   :  { %s571_s6 = scalar_lea.vmem %s639_s15, 8192  ;;  %p576_p12 = scmp.lt.s32.totalorder %s639_s15, %s639_s15 }
  0x1a   :  { %p572_p11 = scmp.ne.s32.totalorder %s639_s15, %s571_s6  ;;  %p577_p13 = scmp.lt.s32.totalorder %s571_s6, %s571_s6 }
  0x1c   :  { %p578_p0 = por %p577_p13, %p576_p12 }
  0x1e   :  { %p579_p1 = pnand %p578_p0, %p572_p11 }
  0x20   :  { %582 = shalt.err (!%p579_p1)
}
  0x21   :  { %s613_s0 = smov 128   ;;  %s614_s7 = smov 8  }
  0x22   :  { %32 = dma.hbm_to_vmem [thread:$0]  %s709_s1, 8192, %s639_s15, [#allocation6], %s613_s0, %s613_s0, %s614_s7  }
  0x23   :  { %605 = dma.done.wait [#allocation3], 128  }
  0x24   :  { %606 = vsyncadd [#allocation3], 4294967168 }
  0x25   :  { %607 = dma.done.wait [#allocation6], 8192  }
  0x26   :  { %608 = vsyncadd [#allocation6], 4294959104  ;;  %v615_v0 = vmov 0.0|0.0   ;;  %vm616_vm0 = vmmov 0   ;;  %v617_v1 = vmov 0.0   ;;  %v42_v2 = vld [vmem:[#allocation5] sm:$0xff] }
  0x27   :  { %494 = vmatprep.subr.bf16.mxu0 %v615_v0  ;;  %458 = vmatprep.mubr.msk.f32.mxu0 %vm616_vm0, %v617_v1  ;;  %v43_v3 = vld [vmem:[#allocation5 + $0x8] sm:$0xff]  ;;  %v41_v5 = vld [vmem:[#allocation2] sm:$0xff]  ;;  %vm51_vm1 = vcmask 130048   ;;  %v132_v6 = vld [vmem:[#allocation5 + $0x80] sm:$0xff]  ;;  %vm144_vm2 = vcmask 261120   ;;  %s618_s17 = smov [#allocation7]  }
  0x28   :  { %497 = vmatprep.subr.bf16.mxu1 %v615_v0  ;;  %469 = vmatprep.mubr.msk.f32.mxu1 %vm616_vm0, %v617_v1  ;;  %v495_v4 = vpack.c.bf16 %v43_v3, %v42_v2  ;;  %v133_v7 = vld [vmem:[#allocation5 + $0x88] sm:$0xff]  ;;  %v134_v9 = vld [vmem:[#allocation5 + $0x90] sm:$0xff]  ;;  %v135_v10 = vld [vmem:[#allocation5 + $0x98] sm:$0xff]  ;;  %s415_s18 = sshll.u32 %s618_s17, 4  ;;  %vm407_vm3 = vcmask 64512   ;;  %s416_s18 = int_to_ptr.vmem [resolvable:$true] %s415_s18 }
  0x29   :  { %v498_v8 = vpack.c.bf16 %v133_v7, %v132_v6  ;;  %v501_v11 = vpack.c.bf16 %v135_v10, %v134_v9  ;;  %v425_v12 = vld [vmem:[%s710_s2] ss:$0 sm:$0xff]  ;;  %v225_v22 = vld [vmem:[#allocation5 + $0x100] sm:$0xff]  ;;  %v226_v23 = vld [vmem:[#allocation5 + $0x108] sm:$0xff]  ;;  %s583_s19 = scalar_lea.vmem %s416_s18, 128  ;;  %p588_p3 = scmp.lt.s32.totalorder %s416_s18, %s416_s18 }
  0x2a   :  { %496 = vmatpush3.bf16.msra.mxu0 %v495_v4  ;;  %v504_v24 = vpack.c.bf16 %v226_v23, %v225_v22  ;;  %v227_v25 = vld [vmem:[#allocation5 + $0x110] sm:$0xff]  ;;  %v228_v26 = vld [vmem:[#allocation5 + $0x118] sm:$0xff]  ;;  %v317_v38 = vld [vmem:[#allocation5 + $0x180] sm:$0xff]  ;;  %p584_p2 = scmp.ne.s32.totalorder %s416_s18, %s583_s19  ;;  %p589_p4 = scmp.lt.s32.totalorder %s583_s19, %s583_s19 }
  0x2b   :  { %503 = vmatprep.subr.bf16.mxu0 %v615_v0  ;;  %499 = vmatpush3.bf16.msra.mxu1 %v498_v8  ;;  %v507_v27 = vpack.c.bf16 %v228_v26, %v227_v25  ;;  %v428_v28 = vld [vmem:[%s710_s2 + $0x1] ss:$0 sm:$0xff]  ;;  %v318_v39 = vld [vmem:[#allocation5 + $0x188] sm:$0xff]  ;;  %v319_v41 = vld [vmem:[#allocation5 + $0x190] sm:$0xff] }
  0x2c   :  { %500 = vmatprep.subr.bf16.mxu1 %v615_v0  ;;  %v510_v40 = vpack.c.bf16 %v318_v39, %v317_v38  ;;  %v320_v42 = vld [vmem:[#allocation5 + $0x198] sm:$0xff]  ;;  %p590_p5 = por %p589_p4, %p588_p3 }
  0x2d   :  { %459 = vmatmul.mubr.msk.f32.vlgmr.msra.gmra.mrb[0].mxu0 %vm51_vm1, %v41_v5  ;;  %v513_v43 = vpack.c.bf16 %v320_v42, %v319_v41  ;;  %v431_v44 = vld [vmem:[%s710_s2 + $0x2] ss:$0 sm:$0xff]  ;;  %v434_v54 = vld [vmem:[%s710_s2 + $0x3] ss:$0 sm:$0xff] }
  0x2e   :  { %480 = vmatprep.mubr.msk.f32.mxu0 %vm616_vm0, %v617_v1  ;;  %505 = vmatpush3.bf16.msra.mxu0 %v504_v24  ;;  %p591_p6 = pnand %p590_p5, %p584_p2 }
  0x2f   :  { %502 = vmatpush3.bf16.msra.mxu1 %v501_v11  ;;  %506 = vmatprep.subr.bf16.mxu0 %v615_v0 }
  0x30   :  { %509 = vmatprep.subr.bf16.mxu1 %v615_v0 }
  0x32   :  { %508 = vmatpush3.bf16.msra.mxu0 %v507_v27 }
 0x100   :  { %v121_v13 = vpop.f32.mrb[0].mxu0 }
 0x101   :  { %v122_v14 = vadd.f32 %v425_v12, %v121_v13  ;;  %v460_v15 = vpop.f32.mrb[1].mxu0 }
 0x103   :  { %v125_v16 = vsub.f32 0.0, %v122_v14 }
 0x105   :  { %v126_v17 = vmul.f32 1.442695, %v125_v16 }
 0x107   :  { %523 = vpow2.f32 %v126_v17 }
 0x111   :  { %v524_v18 = vpop.eup %523 }
 0x112   :  { %v128_v19 = vadd.f32 1.0, %v524_v18 }
 0x114   :  { %525 = vrcp.f32 %v128_v19 }
 0x11e   :  { %v526_v20 = vpop.eup %525 }
 0x11f   :  { %v130_v21 = vmul.f32 %v526_v20, %v122_v14 }
 0x121   :  { %470 = vmatmul.mubr.msk.f32.vlgmr.msra.gmra.mrb[0].mxu1 %vm144_vm2, %v130_v21 }
 0x122   :  { %491 = vmatprep.mubr.msk.f32.mxu1 %vm616_vm0, %v617_v1  ;;  %511 = vmatpush3.bf16.msra.mxu1 %v510_v40 }
 0x123   :  { %512 = vmatprep.subr.bf16.mxu1 %v615_v0 }
 0x126   :  { %514 = vmatpush3.bf16.msra.mxu1 %v513_v43 }
 0x1f4   :  { %v214_v29 = vpop.f32.mrb[0].mxu1 }
 0x1f5   :  { %v215_v30 = vadd.f32 %v428_v28, %v214_v29  ;;  %v471_v31 = vpop.f32.mrb[1].mxu1 }
 0x1f7   :  { %v218_v32 = vsub.f32 0.0, %v215_v30 }
 0x1f9   :  { %v219_v33 = vmul.f32 1.442695, %v218_v32 }
 0x1fb   :  { %527 = vpow2.f32 %v219_v33 }
 0x205   :  { %v528_v34 = vpop.eup %527 }
 0x206   :  { %v221_v35 = vadd.f32 1.0, %v528_v34 }
 0x208   :  { %529 = vrcp.f32 %v221_v35 }
 0x212   :  { %v530_v36 = vpop.eup %529 }
 0x213   :  { %v223_v37 = vmul.f32 %v530_v36, %v215_v30 }
 0x215   :  { %481 = vmatmul.mubr.msk.f32.vlgmr.msra.gmra.mrb[2].mxu0 %vm144_vm2, %v223_v37 }
 0x2e8   :  { %v306_v45 = vpop.f32.mrb[2].mxu0 }
 0x2e9   :  { %v307_v46 = vadd.f32 %v431_v44, %v306_v45  ;;  %v482_v47 = vpop.f32.mrb[3].mxu0 }
 0x2eb   :  { %v310_v48 = vsub.f32 0.0, %v307_v46 }
 0x2ed   :  { %v311_v49 = vmul.f32 1.442695, %v310_v48 }
 0x2ef   :  { %531 = vpow2.f32 %v311_v49 }
 0x2f9   :  { %v532_v50 = vpop.eup %531 }
 0x2fa   :  { %v313_v51 = vadd.f32 1.0, %v532_v50 }
 0x2fc   :  { %533 = vrcp.f32 %v313_v51 }
 0x306   :  { %v534_v52 = vpop.eup %533 }
 0x307   :  { %v315_v53 = vmul.f32 %v534_v52, %v307_v46 }
 0x309   :  { %492 = vmatmul.mubr.msk.f32.vlgmr.msra.gmra.mrb[2].mxu1 %vm144_vm2, %v315_v53 }
 0x3dc   :  { %v398_v55 = vpop.f32.mrb[2].mxu1 }
 0x3dd   :  { %v399_v56 = vadd.f32 %v434_v54, %v398_v55  ;;  %v493_v57 = vpop.f32.mrb[3].mxu1 }
 0x3df   :  { %v402_v58 = vsub.f32 0.0, %v399_v56 }
 0x3e1   :  { %v403_v59 = vmul.f32 1.442695, %v402_v58 }
 0x3e3   :  { %535 = vpow2.f32 %v403_v59 }
 0x3ed   :  { %v536_v60 = vpop.eup %535 }
 0x3ee   :  { %v405_v61 = vadd.f32 1.0, %v536_v60 }
 0x3f0   :  { %537 = vrcp.f32 %v405_v61 }
 0x3fa   :  { %v538_v62 = vpop.eup %537 }
 0x3fb   :  { %408 = vst.msk [vmem:[#allocation7] sm:$0xff] %vm407_vm3, %v538_v62 }
 0x3fc   :  { %594 = shalt.err (!%p591_p6)
}
 0x3fd   :  { %s595_s21 = scalar_lea.hbm %s711_s3, 128 }
 0x3fe   :  { %p596_p7 = scmp.ne.s32.totalorder %s711_s3, %s595_s21  ;;  %p599_p8 = scmp.lt.u32.totalorder %s595_s21, %s711_s3 }
 0x400   :  { %p601_p9 = pnand %p599_p8, %p596_p7 }
 0x402   :  { %604 = shalt.err (!%p601_p9)
}
 0x403   :  { %418 = dma.vmem_to_hbm [thread:$0]  %s416_s18, 128, %s711_s3, [#allocation4]  }
 0x404   :  { %609 = dma.done.wait [#allocation4], 128  }
 0x405   :  { %610 = vsyncadd [#allocation4], 4294967168 }
 0x406   :  { %422 = vsyncpa [#allocation3], 1 }
 0x407   :  { %423 = vsyncpa [#allocation6], 1 }
 0x408   :  { %424 = vsyncpa [#allocation4], 1 }

</bundles_post_ra>
